<compile_context>
chip_gen: v7x
topology: tpu7x:2x2x1
jax: 0.10.0
libtpu: 0.0.40
codegen_flags: <defaults>
</compile_context>

<pallas_src>
import jax
import jax.numpy as jnp
from jax import lax
from jax.experimental import pallas as pl
from jax.experimental.pallas import tpu as pltpu


def _comatch_kernel(w_ref, g_ref, x_ref, o_ref):
    # w_ref: (C, C)          shared weight (same block every grid step)
    # g_ref: (1, C, C)       Gram target for this batch element
    # x_ref: (1, C, TILE_HW) flattened feature-map tile
    # o_ref: (1, C, TILE_HW) output tile
    w = w_ref[...]       # (C, C), native dtype
    g = g_ref[0]         # (C, C)
    x = x_ref[0]         # (C, TILE_HW)

    # P = W @ G  (cheap C^3; recomputed per HW tile). f32 accumulation.
    p = lax.dot_general(
        w, g, dimension_numbers=(((1,), (0,)), ((), ())),
        preferred_element_type=jnp.float32)
    # Feed the MXU operands in the feature dtype (no-op for f32, bf16 path for
    # bf16 models); accumulate in f32.
    p = p.astype(x_ref.dtype)

    # R = P^T @ X via transposed-LHS contraction (contract LHS dim 0 with RHS
    # dim 0) -> no materialized transpose.
    r = lax.dot_general(
        p, x, dimension_numbers=(((0,), (0,)), ((), ())),
        preferred_element_type=jnp.float32)

    o_ref[0] = r.astype(o_ref.dtype)


def _pick_hw_tile(HW, target=2048):
    """Largest multiple of 128 that divides HW and is <= target; else HW."""
    if HW <= target:
        return HW
    t = (target // 128) * 128
    while t >= 128:
        if HW % t == 0:
            return t
        t -= 128
    return HW  # fallback: single full-width tile


def comatch_forward(x, weight, G):
    """x: [B, C, H, W], weight: [1, C, C], G: [B, C, C] -> [B, C, H, W]."""
    B, C, H, W = x.shape
    HW = H * W
    tile_hw = _pick_hw_tile(HW)
    n_hw = HW // tile_hw

    x_flat = x.reshape(B, C, HW)
    w2d = weight.reshape(C, C)

    itemsize = jnp.dtype(x.dtype).itemsize
    cost = pl.CostEstimate(
        flops=2 * B * n_hw * C * C * C + 2 * B * C * C * HW,
        transcendentals=0,
        bytes_accessed=(2 * B * C * HW + B * C * C + C * C) * itemsize,
    )

    out_flat = pl.pallas_call(
        _comatch_kernel,
        out_shape=jax.ShapeDtypeStruct((B, C, HW), x.dtype),
        grid_spec=pltpu.PrefetchScalarGridSpec(
            num_scalar_prefetch=0,
            grid=(B, n_hw),
            in_specs=[
                # shared weight: constant block across the whole grid
                pl.BlockSpec((C, C), lambda b, t: (0, 0)),
                # per-batch Gram target: constant along the HW axis
                pl.BlockSpec((1, C, C), lambda b, t: (b, 0, 0)),
                # per-batch, per-HW-tile feature slab (lane-dense)
                pl.BlockSpec((1, C, tile_hw), lambda b, t: (b, 0, t)),
            ],
            out_specs=pl.BlockSpec((1, C, tile_hw), lambda b, t: (b, 0, t)),
        ),
        compiler_params=pltpu.CompilerParams(
            dimension_semantics=("parallel", "parallel"),
            # Explicit budget: fits double-buffered x/out tiles + G/W even for
            # C=1024, TILE_HW=2048 f32, and stays under v7x's 64 MiB physical.
            vmem_limit_bytes=48 * 1024 * 1024,
        ),
        cost_estimate=cost,
    )(w2d, G, x_flat)

    return out_flat.reshape(B, C, H, W)


def reference_forward(x, weight, G):
    """Pure-JAX reference mirroring the PyTorch module."""
    B, C, H, W = x.shape
    P = jnp.einsum("ij,bjk->bik", weight.reshape(C, C), G)        # W @ G[b]
    R = jnp.einsum("bji,bjk->bik", P, x.reshape(B, C, H * W))     # P[b].T @ X[b]
    return R.reshape(B, C, H, W)


if __name__ == "__main__":
    key = jax.random.PRNGKey(0)
    k_w, k_x, k_t = jax.random.split(key, 3)

    B, C, H, W = 2, 4, 16, 16

    # Parameter init per reset_parameters(): uniform(0.0, 0.02), shape [1, C, C].
    weight = jax.random.uniform(k_w, (1, C, C), dtype=jnp.float32,
                                minval=0.0, maxval=0.02)

    # Content features x and a Gram-matrix target G (as set_target would supply).
    x = jax.random.normal(k_x, (B, C, H, W), dtype=jnp.float32)
    f_s = jax.random.normal(k_t, (B, C, H, W), dtype=jnp.float32)
    f_s_flat = f_s.reshape(B, C, H * W)
    G = jnp.einsum("bik,bjk->bij", f_s_flat, f_s_flat) / (C * H * W)  # [B, C, C]

    out = comatch_forward(x, weight, G)
    out = jax.block_until_ready(out)

    ref = reference_forward(x, weight, G)
    assert out.shape == x.shape
    assert jnp.allclose(out, ref, atol=1e-4, rtol=1e-4), "mismatch vs reference"

    print("KERNEL_OK")
</pallas_src>

<mosaic_0001>
module attributes {stable_mosaic.version = 11 : i64} {
  func.func @_comatch_kernel(%arg0: i32, %arg1: i32, %arg2: memref<4x4xf32, #tpu.memory_space<vmem>>, %arg3: memref<1x4x4xf32, #tpu.memory_space<vmem>>, %arg4: memref<1x4x256xf32, #tpu.memory_space<vmem>>, %arg5: memref<1x4x256xf32, #tpu.memory_space<vmem>>) attributes {dimension_semantics = [#tpu.dimension_semantics<parallel>, #tpu.dimension_semantics<parallel>], iteration_bounds = array<i64: 2, 1>, scalar_prefetch = 0 : i64, scratch_operands = 0 : i64, tpu.core_type = #tpu.core_type<tc>, window_params = [{pipeline_mode = #tpu.pipeline_mode<synchronous>, transform_indices = @transform_0, window_bounds = array<i64: 4, 4>}, {transform_indices = @transform_1, window_bounds = array<i64: 1, 4, 4>}, {transform_indices = @transform_2, window_bounds = array<i64: 1, 4, 256>}, {transform_indices = @transform_3, window_bounds = array<i64: 1, 4, 256>}]} {
    %c0 = arith.constant 0 : index
    %c0_0 = arith.constant 0 : index
    %0 = vector.load %arg2[%c0, %c0_0] : memref<4x4xf32, #tpu.memory_space<vmem>>, vector<4x4xf32>
    %c0_1 = arith.constant 0 : index
    %c0_2 = arith.constant 0 : index
    %c0_3 = arith.constant 0 : index
    %1 = vector.load %arg3[%c0_1, %c0_2, %c0_3] : memref<1x4x4xf32, #tpu.memory_space<vmem>>, vector<1x4x4xf32>
    %2 = vector.shape_cast %1 : vector<1x4x4xf32> to vector<4x4xf32>
    %c0_4 = arith.constant 0 : index
    %c0_5 = arith.constant 0 : index
    %c0_6 = arith.constant 0 : index
    %3 = vector.load %arg4[%c0_4, %c0_5, %c0_6] : memref<1x4x256xf32, #tpu.memory_space<vmem>>, vector<1x4x256xf32>
    %4 = vector.shape_cast %3 : vector<1x4x256xf32> to vector<4x256xf32>
    %cst = arith.constant dense<0.000000e+00> : vector<4x4xf32>
    %5 = tpu.matmul %0, %2, %cst {dimension_numbers = #tpu.dot_dimension_numbers<[1], [0], [0], [1], [0, 0, 1, 1], [], []>} : vector<4x4xf32>, vector<4x4xf32>, vector<4x4xf32> -> vector<4x4xf32>
    %cst_7 = arith.constant dense<0.000000e+00> : vector<4x256xf32>
    %6 = tpu.matmul %5, %4, %cst_7 {dimension_numbers = #tpu.dot_dimension_numbers<[0], [0], [1], [1], [0, 1, 1, 1], [], []>} : vector<4x4xf32>, vector<4x256xf32>, vector<4x256xf32> -> vector<4x256xf32>
    %c0_8 = arith.constant 0 : index
    %c0_9 = arith.constant 0 : index
    %c0_10 = arith.constant 0 : index
    %7 = vector.load %arg5[%c0_8, %c0_9, %c0_10] : memref<1x4x256xf32, #tpu.memory_space<vmem>>, vector<1x4x256xf32>
    %8 = vector.shape_cast %7 : vector<1x4x256xf32> to vector<4x256xf32>
    %9 = vector.shape_cast %6 : vector<4x256xf32> to vector<1x4x256xf32>
    tpu.vector_store %arg5[%c0_8, %c0_9, %c0_10], %9 {strides = array<i32>} : memref<1x4x256xf32, #tpu.memory_space<vmem>>, vector<1x4x256xf32>,
    return
  }
  func.func @transform_0(%arg0: i32, %arg1: i32) -> (i32, i32) {
    %c0_i32 = arith.constant 0 : i32
    %c0_i32_0 = arith.constant 0 : i32
    %c0_i32_1 = arith.constant 0 : i32
    return %c0_i32, %c0_i32_0 : i32, i32
  }
  func.func @transform_1(%arg0: i32, %arg1: i32) -> (i32, i32, i32) {
    %c0_i32 = arith.constant 0 : i32
    %c0_i32_0 = arith.constant 0 : i32
    %c0_i32_1 = arith.constant 0 : i32
    return %arg0, %c0_i32, %c0_i32_0 : i32, i32, i32
  }
  func.func @transform_2(%arg0: i32, %arg1: i32) -> (i32, i32, i32) {
    %c0_i32 = arith.constant 0 : i32
    %c0_i32_0 = arith.constant 0 : i32
    return %arg0, %c0_i32, %arg1 : i32, i32, i32
  }
  func.func @transform_3(%arg0: i32, %arg1: i32) -> (i32, i32, i32) {
    %c0_i32 = arith.constant 0 : i32
    %c0_i32_0 = arith.constant 0 : i32
    return %arg0, %c0_i32, %arg1 : i32, i32, i32
  }
}

</mosaic_0001>

<bundles_post_ra>
// kernel: tpu_custom_call.1
= control target key start
LH: loop header
LB: loop body
LE: loop exit
PB: predicated region body
PF: predicated region fallthrough
CT: control target
= control target key end

     0   :  { %s1151_s0 = inlined_call_operand.hbm [shape: f32[4,4], index: 0, kind: input, shape index: {}]   ;;  %s1152_s1 = inlined_call_operand.hbm [shape: f32[2,4,4], index: 1, kind: input, shape index: {}]   ;;  %s1153_s2 = inlined_call_operand.hbm [shape: f32[2,4,256], index: 2, kind: input, shape index: {}]   ;;  %s1154_s3 = inlined_call_operand.hbm [shape: f32[2,4,256], index: 3, kind: output, shape index: {}]  }
   0x1   :  { %1160 = sst [smem:[#allocation12_spill]] %s1152_s1 }
   0x2   :  { %8 = vsyncpa [#allocation3], 0 }
   0x3   :  { %9 = vsyncpa [#allocation6], 0 }
   0x4   :  { %11 = vsyncpa [#allocation6 + $0x1], 0 }
   0x5   :  { %12 = vsyncpa [#allocation4], 0 }
   0x6   :  { %14 = vsyncpa [#allocation4 + $0x1], 0  ;;  %s902_s12 = smov 0   ;;  %s904_s13 = smov 0  }
   0x7   :  { %s906_s14 = smov 0   ;;  %s908_s15 = smov 0  }
   0x8   :  { %s910_s16 = smov 0   ;;  %s912_s17 = smov 0  }
   0x9 LB: > { %s32_s18 = sadd.s32 1, %s870_s16  ;;  %s60_s19 = sadd.s32 1, %s862_s14  ;;  %s874_s17 = sphi %s912_s17, %s20_s17   ;;  %s870_s16 = sphi %s910_s16, %s1180_s16   ;;  %s866_s15 = sphi %s908_s15, %s1179_s15   ;;  %s862_s14 = sphi %s906_s14, %s1178_s14   ;;  %s858_s13 = sphi %s904_s13, %s1177_s13   ;;  %s854_s12 = sphi %s902_s12, %s1176_s12  }
   0xa   : > { %p34_p0 = scmp.ge.s32.totalorder %s32_s18, 2  ;;  %p67_p1 = scmp.ne.s32.totalorder %s862_s14, %s858_s13 }
   0xb   : > { %p68_p2 = scmp.eq.s32.totalorder %s874_s17, 0  ;;  %p645_p5 = scmp.lt.s32.totalorder %s874_s17, 2 }
   0xc   : > { %s1182_s18 = smov (%p34_p0, %s32_s18), 0  ;;  %s164_s21 = sand.u32 1, %s874_s17  }
   0xd   : > { %p69_p4 = por %p68_p2, %p67_p1  ;;  %s57_s20 = ssub.s32 %s870_s16, %s1182_s18 }
   0xe   : > { %p58_p6 = scmp.eq.s32.totalorder %s57_s20, 0  ;;  %s166_s22 = sand.u32 1, %s862_s14  }
   0xf   : > { %s591_s23 = sshll.u32 %s870_s16, 6  ;;  %s590_s25 = sshll.u32 %s166_s22, 2 }
  0x10   : > { %s950_s24 = scalar_select %p58_p6, %s862_s14, %s60_s19  }
  0x11   : > { %s1161_s1 = sld [smem:[#allocation12_spill]]  ;;  %p957_p7 = pnand %p645_p5, %p69_p4 }
  0x12   : > { %s168_s30 = scalar_lea.vmem [#allocation5], %s590_s25  ;;  %s961_s5 = sshll.u32 %s166_s22, 3 }
  0x13   : > { %s175_s4 = sshll.u32 %s168_s30, 4  ;;  %s965_s6 = scalar_lea.sflag [#allocation6], %s164_s21  ;;  %s963_s4 = int_to_ptr.vmem [resolvable:$true] %s175_s4 }
  0x14   : > { %p702_p9 = pneg %p957_p7 }
  0x17   : > { %s955_s28 = scalar_lea.hbm %s1161_s1, %s591_s23  ;;  %s705_s10 = scalar_lea.hbm %s1161_s1, 128 }
  0x18   : > { %s700_s7 = scalar_lea.hbm %s955_s28, 64  ;;  %p706_p12 = scmp.lt.u32.totalorder %s955_s28, %s1161_s1 }
  0x19   : > { %p701_p8 = scmp.ne.s32.totalorder %s955_s28, %s700_s7  ;;  %p707_p13 = scmp.lt.u32.totalorder %s705_s10, %s700_s7 }
  0x1a   : > { %p709_p2 = scmp.lt.u32.totalorder %s700_s7, %s955_s28 }
  0x1b   : > { %p703_p10 = pnand %p702_p9, %p701_p8  ;;  %p708_p0 = por %p707_p13, %p706_p12 }
  0x1d   : > { %p704_p11 = pneg %p703_p10  ;;  %p710_p4 = por %p709_p2, %p708_p0 }
  0x1f   : > { %p711_p5 = pnand %p710_p4, %p704_p11 }
  0x21   : > { %714 = shalt.err (!%p711_p5)
}
  0x22   : > { %s715_s20 = scalar_lea.vmem %s963_s4, 64  ;;  %s876_s21 = smov [#allocation5]  }
  0x23   : > { %p716_p6 = scmp.ne.s32.totalorder %s963_s4, %s715_s20  ;;  %s720_s22 = sshll.u32 %s876_s21, 4  ;;  %s721_s22 = int_to_ptr.vmem [resolvable:$false] %s720_s22 }
  0x24   : > { %s722_s23 = scalar_lea.vmem %s721_s22, 128  ;;  %p723_p3 = scmp.lt.s32.totalorder %s963_s4, %s721_s22 }
  0x25   : > { %p718_p8 = pnand %p716_p6, %p702_p9  ;;  %p724_p12 = scmp.lt.s32.totalorder %s722_s23, %s715_s20 }
  0x27   : > { %p719_p10 = pneg %p718_p8  ;;  %p725_p13 = por %p724_p12, %p723_p3 }
  0x29   : > { %p726_p0 = pnand %p725_p13, %p719_p10 }
  0x2b   : > { %729 = shalt.err (!%p726_p0)
}
  0x2c   : > { %636 = dma.hbm_to_vmem [thread:$0]  (!%p957_p7), %s955_s28, 64, %s963_s4, %s965_s6  }
  0x2d   : > { %s994_s25 = sadd.s32 4294967295, %s874_s17   ;;  %s586_s26 = sadd.s32 4294967294, %s874_s17  }
  0x2e   : > { %p73_p3 = scmp.ne.s32.totalorder %s858_s13, %s854_s12  ;;  %p1155_p11 = scmp.eq.s32.totalorder %s994_s25, 0 }
  0x2f   : > { %p127_p2 = scmp.eq.s32.totalorder %s994_s25, 1  ;;  %p133_p4 = scmp.eq.s32.totalorder %s586_s26, 1 }
  0x30   : > { %p1003_p5 = por %p1155_p11, %p73_p3  ;;  %p587_p6 = scmp.ge.s32.totalorder %s874_s17, 1 }
  0x31   : > { %p1011_p8 = por %p127_p2, %p67_p1  ;;  %p1015_p10 = por %p133_p4, %p73_p3 }
  0x32   : > { %s1163_s27 = scalar_select %p1003_p5, 1, 0 }
  0x33   : > { %s1164_s28 = scalar_select %p1011_p8, 1, 0 }
  0x34   : > { %s1165_s30 = scalar_select %p1015_p10, 1, 0 }
  0x35   : > { %p140_p12 = scmp.lt.s32.totalorder %s874_s17, 3  ;;  %s877_s7 = smov [#allocation2]  }
  0x36   : > { %s153_s8 = sshll.u32 %s877_s7, 4  ;;  %s610_s9 = sshll.u32 %s870_s16, 7  ;;  %s1032_s8 = int_to_ptr.vmem [resolvable:$true] %s153_s8 }
  0x37   : > { %p1020_p13 = pnand %p587_p6, %p140_p12  ;;  %s1030_s19 = scalar_lea.hbm %s1153_s2, %s610_s9 }
  0x38   : > { %s186_s20 = scalar_lea.vmem [#allocation7], %s961_s5  ;;  %s730_s23 = scalar_lea.hbm %s1030_s19, 128 }
  0x39   : > { %s1166_s4 = scalar_select %p1020_p13, 1, 0 }
  0x3a   : > { %p629_p0 = pneg %p1020_p13  ;;  %s196_s21 = sshll.u32 %s186_s20, 4  ;;  %s197_s21 = int_to_ptr.vmem [resolvable:$true] %s196_s21 }
  0x3b   : > { %p731_p3 = scmp.ne.s32.totalorder %s1030_s19, %s730_s23  ;;  %s735_s9 = scalar_lea.hbm %s1153_s2, 256 }
  0x3c   : > { %p1037_p1 = pnand %p629_p0, %p1155_p11  ;;  %p736_p6 = scmp.lt.u32.totalorder %s1030_s19, %s1153_s2 }
  0x3d   : > { %p733_p2 = pnand %p731_p3, %p702_p9  ;;  %p737_p12 = scmp.lt.u32.totalorder %s735_s9, %s730_s23 }
  0x3e   : > { %s1167_s22 = scalar_select %p1037_p1, 1, 0 }
  0x3f   : > { %p734_p4 = pneg %p733_p2  ;;  %p738_p0 = por %p737_p12, %p736_p6 }
  0x40   : > { %p739_p11 = scmp.lt.u32.totalorder %s730_s23, %s1030_s19 }
  0x42   : > { %p740_p10 = por %p739_p11, %p738_p0 }
  0x44   : > { %p741_p8 = pnand %p740_p10, %p734_p4 }
  0x46   : > { %744 = shalt.err (!%p741_p8)
}
  0x47   : > { %s745_s5 = scalar_lea.vmem %s197_s21, 128  ;;  %s878_s20 = smov [#allocation7]  }
  0x48   : > { %p746_p5 = scmp.ne.s32.totalorder %s197_s21, %s745_s5  ;;  %s750_s26 = sshll.u32 %s878_s20, 4  ;;  %s751_s26 = int_to_ptr.vmem [resolvable:$false] %s750_s26 }
  0x49   : > { %s752_s7 = scalar_lea.vmem %s751_s26, 256  ;;  %p753_p13 = scmp.lt.s32.totalorder %s197_s21, %s751_s26 }
  0x4a   : > { %p748_p3 = pnand %p746_p5, %p702_p9  ;;  %p754_p1 = scmp.lt.s32.totalorder %s752_s7, %s745_s5 }
  0x4c   : > { %p749_p2 = pneg %p748_p3  ;;  %p755_p6 = por %p754_p1, %p753_p13 }
  0x4e   : > { %p756_p12 = pnand %p755_p6, %p749_p2 }
  0x50   : > { %759 = shalt.err (!%p756_p12)
}
  0x51   : > { %639 = dma.hbm_to_vmem [thread:$0]  (!%p957_p7), %s1030_s19, 128, %s197_s21, %s965_s6  }
  0x52   : > { %s760_s10 = scalar_lea.hbm %s1151_s0, 64  ;;  %p1168_p11 = scmp.ne.s32.totalorder %s1167_s22, 0 }
  0x53   : > { %p761_p9 = scmp.ne.s32.totalorder %s1151_s0, %s760_s10  ;;  %p767_p13 = scmp.lt.u32.totalorder %s760_s10, %s1151_s0 }
  0x54   : > { %p762_p5 = pneg %p1168_p11 }
  0x56   : > { %p763_p8 = pnand %p762_p5, %p761_p9 }
  0x58   : > { %p764_p10 = pneg %p763_p8 }
  0x5a   : > { %p769_p1 = pnand %p767_p13, %p764_p10 }
  0x5c   : > { %772 = shalt.err (!%p769_p1)
}
  0x5d   : > { %s773_s29 = scalar_lea.vmem %s1032_s8, 64  ;;  %p781_p3 = scmp.lt.s32.totalorder %s1032_s8, %s1032_s8 }
  0x5e   : > { %p774_p7 = scmp.ne.s32.totalorder %s1032_s8, %s773_s29  ;;  %p782_p2 = scmp.lt.s32.totalorder %s773_s29, %s773_s29 }
  0x60   : > { %p776_p4 = pnand %p774_p7, %p762_p5  ;;  %p783_p6 = por %p782_p2, %p781_p3 }
  0x62   : > { %p777_p0 = pneg %p776_p4 }
  0x64   : > { %p784_p12 = pnand %p783_p6, %p777_p0 }
  0x66   : > { %787 = shalt.err (!%p784_p12)
}
  0x67   : > { %632 = dma.hbm_to_vmem [thread:$0]  (!%p1168_p11), %s1151_s0, 64, %s1032_s8, [#allocation3]  }
  0x68   : > { %p1169_p9 = scmp.ne.s32.totalorder %s1166_s4, 0 }
  0x69   : > { %p1170_p8 = scmp.eq.s32.totalorder (!%p1169_p9), %s994_s25, 0 }
  0x6a   : > { %205 = sbr.rel (%p1169_p9) target bundleno = 692 (0x2b4), region = 32 }
  0x71   : > { %841 = dma.done.wait (%p1170_p8), [#allocation3], 64   ;;  %p1171_p5 = pmov %p1170_p8 }
  0x72   : > { %s211_s19 = sand.u32 1, %s994_s25   ;;  %s1090_s21 = sand.u32 1, %s858_s13  }
  0x73   : > { %843 = vsyncadd (%p1171_p5), [#allocation3], 4294967232  ;;  %s597_s22 = sshll.u32 %s1090_s21, 2  ;;  %s212_s26 = scalar_lea.sflag [#allocation6], %s211_s19 }
  0x74   : > { %s215_s7 = scalar_lea.vmem [#allocation5], %s597_s22  ;;  %p1172_p11 = scmp.ne.s32.totalorder %s1163_s27, 0 }
  0x76   : > { %845 = dma.done.wait (%p1172_p11), %s212_s26, 192  }
  0x77   : > { %847 = vsyncadd (%p1172_p11), %s212_s26, 4294967104  ;;  %v879_v0 = vmov 0.0   ;;  %vm880_vm0 = vmmov 0   ;;  %vm261_vm1 = vcmask 1043456   ;;  %vm257_vm2 = vcmask 31744   ;;  %s598_s25 = sshll.u32 %s1090_s21, 3 }
  0x78   : > { %614 = vmatprep.subr.mxu0 %v879_v0  ;;  %616 = vmatprep.mubr.msk.f32.mxu0 %vm880_vm0, %v879_v0  ;;  %v255_v1 = vld [vmem:[%s215_s7] sm:$0xf]  ;;  %v254_v2 = vld [vmem:[#allocation2] sm:$0xf]  ;;  %s224_s4 = scalar_lea.vmem [#allocation7], %s598_s25  ;;  %s611_s27 = sshll.u32 %s866_s15, 7 }
  0x79   : > { %440 = vmatprep.mubr.f32.mxu1 %v879_v0  ;;  %615 = vmatpush3.msk.msra.mxu0 %vm261_vm1, %v255_v1  ;;  %v256_v3 = vld [vmem:[%s224_s4] sm:$0xff]  ;;  %s251_s8 = scalar_lea.vmem [#allocation8], %s598_s25  ;;  %s1102_s11 = scalar_lea.hbm %s1154_s3, %s611_s27 }
  0x7a   : > { %617 = vmatmul.mubr.msk.f32.vlgmr.msra.gmra.mrb[0].mxu0 %vm257_vm2, %v254_v2  ;;  %v368_v4 = vcombine.high %v256_v3, %v256_v3  ;;  %s469_s23 = sshll.u32 %s251_s8, 4  ;;  %s453_s5 = scalar_lea.sflag [#allocation4], %s1090_s21  ;;  %s1104_s23 = int_to_ptr.vmem [resolvable:$true] %s469_s23 }
  0x7b   : > { %s788_s20 = scalar_lea.vmem %s1104_s23, 128  ;;  %p1173_p13 = scmp.ne.s32.totalorder %s1164_s28, 0 }
  0x7c   : > { %602 = vmatprep.subr.msk.mxu1 %vm261_vm1, %v368_v4  ;;  %p789_p10 = scmp.ne.s32.totalorder %s1104_s23, %s788_s20  ;;  %s881_s15 = smov [#allocation8]  }
  0x7d   : > { %603 = vmatpush1.msk.msra.mxu1 %vm261_vm1, %v256_v3  ;;  %s792_s29 = sshll.u32 %s881_s15, 4  ;;  %s793_s29 = int_to_ptr.vmem [resolvable:$false] %s792_s29 }
  0x7e   : > { %p790_p1 = pnand %p789_p10, %p1173_p13  ;;  %s794_s1 = scalar_lea.vmem %s793_s29, 256 }
  0x7f   : > { %p795_p4 = scmp.lt.s32.totalorder %s1104_s23, %s793_s29  ;;  %p796_p0 = scmp.lt.s32.totalorder %s794_s1, %s788_s20 }
  0x80   : > { %p791_p7 = pneg %p790_p1 }
  0x81   : > { %p797_p3 = por %p796_p0, %p795_p4 }
  0x83   : > { %p798_p2 = pnand %p797_p3, %p791_p7 }
 0x14d   : > { %v331_v5 = vpop.f32.mrb[0].mxu0 }
 0x14e   : > { %335 = vxpose.xlu0.b32.start.end [1/1] (short) (narrow) %v331_v5, 8  ;;  %v618_v6 = vpop.f32.mrb[1].mxu0 }
 0x1ce   : > { %v351_v7 = vpop.trf.xlu0 }
 0x1cf   : > { %604 = vmatmul.mubr.msk.f32.vlgmr.msra.gmra.mrb[0].mxu1 %vm257_vm2, %v351_v7 }
 0x2a2   : > { %v442_v8 = vpop.f32.mrb[0].mxu1 }
 0x2a3   : > { %v444_v9 = vpop.f32.mrb[1].mxu1 }
 0x2a4   : > { %v449_v10 = vcombine.low %v442_v8, %v444_v9 }
 0x2a6   : > { %451 = vst [vmem:[%s251_s8] sm:$0xff] %v449_v10 }
 0x2a7   : > { %801 = shalt.err (!%p798_p2)
}
 0x2a8   : > { %s802_s6 = scalar_lea.hbm %s1102_s11, 128  ;;  %s806_s22 = scalar_lea.hbm %s1154_s3, 256 }
 0x2a9   : > { %p803_p6 = scmp.ne.s32.totalorder %s1102_s11, %s802_s6  ;;  %p807_p8 = scmp.lt.u32.totalorder %s1102_s11, %s1154_s3 }
 0x2aa   : > { %p808_p5 = scmp.lt.u32.totalorder %s806_s22, %s802_s6  ;;  %p810_p10 = scmp.lt.u32.totalorder %s802_s6, %s1102_s11 }
 0x2ab   : > { %p804_p12 = pnand %p803_p6, %p1173_p13 }
 0x2ac   : > { %p809_p11 = por %p808_p5, %p807_p8 }
 0x2ad   : > { %p805_p9 = pneg %p804_p12 }
 0x2ae   : > { %p811_p1 = por %p810_p10, %p809_p11 }
 0x2b0   : > { %p812_p7 = pnand %p811_p1, %p805_p9 }
 0x2b2   : > { %815 = shalt.err (!%p812_p7)
}
 0x2b3   : > { %627 = dma.vmem_to_hbm [thread:$0]  (%p1173_p13), %s1104_s23, 128, %s1102_s11, %s453_s5  }
 0x2b4 PF: > { %s481_s25 = sand.u32 1, %s854_s12   ;;  %p1174_p4 = scmp.ne.s32.totalorder %s1165_s30, 0 }
 0x2b5   : > { %p1175_p0 = scmp.ge.s32.totalorder %s874_s17, 2  ;;  %s482_s4 = scalar_lea.sflag [#allocation4], %s481_s25 }
 0x2b7   : > { %p641_p3 = pnand %p1175_p0, %p1174_p4 }
 0x2b9   : > { %849 = dma.done.wait (!%p641_p3), %s482_s4, 128  }
 0x2ba   : > { %851 = vsyncadd (!%p641_p3), %s482_s4, 4294967168  ;;  %s20_s17 = sadd.s32 1, %s874_s17   ;;  %s1176_s12 = smov %s858_s13 }
 0x2bb   : > { %p17_p2 = scmp.ge.s32.totalorder %s20_s17, 4   ;;  %s1177_s13 = smov %s862_s14 }
 0x2bc   : > { %s1178_s14 = smov %s950_s24  ;;  %s1179_s15 = smov %s870_s16 }
 0x2bd   : > { %s1180_s16 = smov %s1182_s18  ;;  %19 = sbr.rel (!%p17_p2) target bundleno = 9 (0x9), region = 93 }
 0x2c4   :  { %487 = vsyncpa [#allocation3], 1 }
 0x2c5   :  { %489 = vsyncpa [#allocation3 + $0x1], 1 }
 0x2c6   :  { %490 = vsyncpa [#allocation6], 1 }
 0x2c7   :  { %492 = vsyncpa [#allocation6 + $0x1], 1 }
 0x2c8   :  { %493 = vsyncpa [#allocation4], 1 }
 0x2c9   :  { %495 = vsyncpa [#allocation4 + $0x1], 1 }

</bundles_post_ra>
